<compile_context>
chip_gen: v7x
topology: tpu7x:2x2x1
jax: 0.10.0
libtpu: 0.0.40
codegen_flags: <defaults>
</compile_context>

<pallas_src>
import jax
import jax.numpy as jnp
from jax.experimental import pallas as pl
from jax.experimental.pallas import tpu as pltpu

# ----- model hyper-parameters (small, consistent with the module) -----
SEQ_LEN = 32          # sequence_length
N_CH = 8              # n_channels
CONV1_W = 8           # conv1_width
POOL_K = 10           # max_pool_kernel_size
POOL_S = 5            # max_pool_stride
H_IN = 10             # input height (fixed by conv2 kernel height = 10)
POST_CONV_W = SEQ_LEN - CONV1_W + 1                 # 25
WOUT = (POST_CONV_W - POOL_K) // POOL_S + 1         # 4
N_CLASSES = 9
BN_EPS = 1e-5

LANE = 128            # lane width; batch tile is always a multiple of this
MAX_BTILE = 1024      # cap so f32 intermediates stay tiny even on v7x (64 MiB VMEM)


def shallow_cnn_kernel(x_ref, t_ref, bz_ref, lw_ref, lb_ref, o_ref):
    """One grid step = Btile batch samples, batch on the lane axis.

    x_ref  : (H_IN*SEQ_LEN, Btile)       flattened input, row = h*SEQ_LEN + w
    t_ref  : (POST_CONV_W*N_CH, H_IN*SEQ_LEN)  Toeplitz weight = conv1∘conv2∘BN
    bz_ref : (POST_CONV_W*N_CH, 1)       fused bias (row = w*C + c -> bias[c])
    lw_ref : (N_CLASSES, WOUT*N_CH)      linear weight, column = j*C + c
    lb_ref : (N_CLASSES, 1)              linear bias
    o_ref  : (N_CLASSES, Btile)          log-softmax output (lane-dense)
    """
    x = x_ref[...]                                           # (320, Bt)

    # ---- fused conv1 + conv2 + BatchNorm: one MXU matmul ----
    z = jnp.dot(t_ref[...], x, preferred_element_type=jnp.float32)  # (Wp*C, Bt)
    z = z + bz_ref[...]                                      # broadcast (Wp*C, 1)

    # ---- dropout2d: identity in eval mode ----
    # TODO(synk): training-mode channel dropout not implemented (eval semantics used).

    # ---- ELU (alpha=1); clamp exp arg so the discarded branch never overflows ----
    y = jnp.where(z > 0, z, jnp.exp(jnp.minimum(z, 0.0)) - 1.0)

    # ---- MaxPool over width (k=POOL_K, s=POOL_S) ----
    # Rows of y are ordered w*C + c, so the rows for width position w and all
    # channels form one aligned 8-row (= one sublane tile) slice: pure VPU maxes.
    def pool_window(j):
        base = j * POOL_S * N_CH
        m = y[base:base + N_CH, :]
        for k in range(1, POOL_K):
            r = base + k * N_CH
            m = jnp.maximum(m, y[r:r + N_CH, :])
        return m                                             # (C, Bt)

    pooled = jnp.concatenate([pool_window(j) for j in range(WOUT)],
                             axis=0)                         # (WOUT*C, Bt), row = j*C + c

    # ---- Linear (C*WOUT -> N_CLASSES): one matmul, batch stays on lanes ----
    logits = jnp.dot(lw_ref[...], pooled,
                     preferred_element_type=jnp.float32) + lb_ref[...]   # (9, Bt)

    # ---- log_softmax over classes (sublane axis) ----
    m = jnp.max(logits, axis=0, keepdims=True)
    lse = m + jnp.log(jnp.sum(jnp.exp(logits - m), axis=0, keepdims=True))
    o_ref[...] = logits - lse


def prepare_params(w1, b1, w2, b2, gamma, beta, run_mean, run_var, lin_w, lin_b):
    """Fold conv1, conv2, both conv biases and BatchNorm into a single Toeplitz
    matmul weight/bias; rearrange the Linear weight for the (j*C + c) pooled order.
    Raw parameters follow the PyTorch layouts."""
    w1s = w1.reshape(N_CH, CONV1_W)          # conv1 weight (C,1,1,cw) -> (C,cw)
    w2s = w2.reshape(N_CH, N_CH, H_IN)       # conv2 weight (C,C,10,1) -> (C_out,C_in,10)

    bns = gamma / jnp.sqrt(run_var + BN_EPS)              # (C,)
    bnb = beta - run_mean * bns

    # Effective fused conv kernel and bias.
    weff = jnp.einsum('oih,it->oht', w2s, w1s) * bns[:, None, None]   # (C_out, H, cw)
    beff = bns * (b2 + jnp.einsum('oih,i->o', w2s, b1)) + bnb          # (C_out,)

    # Toeplitz matrix: T[w*C + c, h*W + wi] = weff[c, h, wi - w] for 0 <= wi-w < cw.
    t_idx = jnp.arange(SEQ_LEN)[None, :] - jnp.arange(POST_CONV_W)[:, None]   # (Wp, W)
    valid = (t_idx >= 0) & (t_idx < CONV1_W)
    t_cl = jnp.clip(t_idx, 0, CONV1_W - 1)
    T4 = weff[:, :, t_cl]                                   # (C, H, Wp, W)
    T4 = jnp.where(valid[None, None], T4, 0.0)
    toep = T4.transpose(2, 0, 1, 3).reshape(POST_CONV_W * N_CH, H_IN * SEQ_LEN)

    bias_col = jnp.tile(beff, POST_CONV_W)[:, None]         # (Wp*C, 1), row w*C+c -> beff[c]

    # PyTorch flatten order of pooled features is c*WOUT + j; kernel uses j*C + c.
    lwk = lin_w.reshape(N_CLASSES, N_CH, WOUT).transpose(0, 2, 1) \
               .reshape(N_CLASSES, WOUT * N_CH)
    lb_col = lin_b[:, None]
    return toep, bias_col, lwk, lb_col


def _round_up(a, m):
    return (a + m - 1) // m * m


@jax.jit
def shallow_cnn_forward(x, toep, bias_col, lwk, lb_col):
    """x: (B, 1, H_IN, SEQ_LEN) float32 (NCHW). Returns (B, N_CLASSES) log-probs."""
    B = x.shape[0]
    x_flat = x.reshape(B, H_IN * SEQ_LEN)                   # row = h*SEQ_LEN + w

    # Pad batch to a multiple of the lane-aligned batch tile.
    b_pad = _round_up(max(B, LANE), LANE)
    btile = min(b_pad, MAX_BTILE)
    b_pad = _round_up(b_pad, btile)
    if b_pad != B:
        x_flat = jnp.pad(x_flat, ((0, b_pad - B), (0, 0)))
    x_t = x_flat.T                                          # (H*W, B_pad), batch on lanes

    grid = (b_pad // btile,)
    out = pl.pallas_call(
        shallow_cnn_kernel,
        out_shape=jax.ShapeDtypeStruct((N_CLASSES, b_pad), jnp.float32),
        grid=grid,
        in_specs=[
            pl.BlockSpec((H_IN * SEQ_LEN, btile), lambda b: (0, b)),        # x (batch-tiled)
            pl.BlockSpec((POST_CONV_W * N_CH, H_IN * SEQ_LEN), lambda b: (0, 0)),  # Toeplitz W
            pl.BlockSpec((POST_CONV_W * N_CH, 1), lambda b: (0, 0)),        # fused bias
            pl.BlockSpec((N_CLASSES, WOUT * N_CH), lambda b: (0, 0)),       # linear weight
            pl.BlockSpec((N_CLASSES, 1), lambda b: (0, 0)),                 # linear bias
        ],
        out_specs=pl.BlockSpec((N_CLASSES, btile), lambda b: (0, b)),
        compiler_params=pltpu.CompilerParams(
            dimension_semantics=("parallel",),
            vmem_limit_bytes=32 * 1024 * 1024),
    )(x_t, toep, bias_col, lwk, lb_col)
    return out[:, :B].T                                     # (B, N_CLASSES)


def ref_forward(x, w1, b1, w2, b2, gamma, beta, run_mean, run_var, lin_w, lin_b):
    """Pure-JAX layer-by-layer reference of the same forward pass (eval mode)."""
    B = x.shape[0]
    xs = x[:, 0]                                            # (B, H, W)
    w1s = w1.reshape(N_CH, CONV1_W)
    w2s = w2.reshape(N_CH, N_CH, H_IN)
    Wp = POST_CONV_W
    cols = jnp.stack([xs[:, :, t:t + Wp] for t in range(CONV1_W)], axis=-1)  # (B,H,Wp,cw)
    y1 = jnp.einsum('bhwt,ct->bchw', cols, w1s) + b1[None, :, None, None]    # conv1
    y2 = jnp.einsum('bchw,och->bow', y1, w2s) + b2[None, :, None]            # conv2
    bns = gamma / jnp.sqrt(run_var + BN_EPS)
    bnb = beta - run_mean * bns
    z = y2 * bns[None, :, None] + bnb[None, :, None]                         # BN (eval)
    y3 = jnp.where(z > 0, z, jnp.exp(jnp.minimum(z, 0.0)) - 1.0)             # ELU
    pooled = jnp.stack([jnp.max(y3[:, :, j * POOL_S:j * POOL_S + POOL_K], axis=2)
                        for j in range(WOUT)], axis=2)                        # (B,C,WOUT)
    flat = pooled.reshape(B, N_CH * WOUT)
    logits = flat @ lin_w.T + lin_b
    return jax.nn.log_softmax(logits, axis=1)


if __name__ == "__main__":
    key = jax.random.PRNGKey(0)
    ks = jax.random.split(key, 12)

    B = 2
    x = jax.random.normal(ks[0], (B, 1, H_IN, SEQ_LEN), jnp.float32)

    # --- deterministic parameter initialization (synthetic, PyTorch layouts) ---
    w1 = 0.1 * jax.random.normal(ks[1], (N_CH, 1, 1, CONV1_W), jnp.float32)   # conv1 weight
    b1 = 0.1 * jax.random.normal(ks[2], (N_CH,), jnp.float32)                 # conv1 bias
    w2 = 0.1 * jax.random.normal(ks[3], (N_CH, N_CH, H_IN, 1), jnp.float32)   # conv2 weight
    b2 = 0.1 * jax.random.normal(ks[4], (N_CH,), jnp.float32)                 # conv2 bias
    gamma = 1.0 + 0.1 * jax.random.normal(ks[5], (N_CH,), jnp.float32)
    beta = 0.1 * jax.random.normal(ks[6], (N_CH,), jnp.float32)
    run_mean = 0.05 * jax.random.normal(ks[7], (N_CH,), jnp.float32)
    run_var = 1.0 + 0.1 * jax.random.uniform(ks[8], (N_CH,), jnp.float32)
    lin_w = 0.1 * jax.random.normal(ks[9], (N_CLASSES, N_CH * WOUT), jnp.float32)
    lin_b = 0.05 * jnp.arange(N_CLASSES, dtype=jnp.float32)

    params = prepare_params(w1, b1, w2, b2, gamma, beta, run_mean, run_var,
                            lin_w, lin_b)
    out = jax.block_until_ready(shallow_cnn_forward(x, *params))

    ref = jax.block_until_ready(
        ref_forward(x, w1, b1, w2, b2, gamma, beta, run_mean, run_var,
                    lin_w, lin_b))

    assert out.shape == (B, N_CLASSES), out.shape
    if not jnp.allclose(out, ref, atol=1e-3, rtol=1e-3):
        raise AssertionError(
            f"mismatch: max abs err = {float(jnp.max(jnp.abs(out - ref)))}")
    print("KERNEL_OK")
</pallas_src>

<mosaic_0001>
module attributes {stable_mosaic.version = 11 : i64} {
  func.func @shallow_cnn_kernel(%arg0: i32, %arg1: memref<320x128xf32, #tpu.memory_space<vmem>>, %arg2: memref<200x320xf32, #tpu.memory_space<vmem>>, %arg3: memref<200x1xf32, #tpu.memory_space<vmem>>, %arg4: memref<9x32xf32, #tpu.memory_space<vmem>>, %arg5: memref<9x1xf32, #tpu.memory_space<vmem>>, %arg6: memref<9x128xf32, #tpu.memory_space<vmem>>) attributes {dimension_semantics = [#tpu.dimension_semantics<parallel>], iteration_bounds = array<i64: 1>, scalar_prefetch = 0 : i64, scratch_operands = 0 : i64, tpu.core_type = #tpu.core_type<tc>, window_params = [{transform_indices = @transform_0, window_bounds = array<i64: 320, 128>}, {pipeline_mode = #tpu.pipeline_mode<synchronous>, transform_indices = @transform_1, window_bounds = array<i64: 200, 320>}, {pipeline_mode = #tpu.pipeline_mode<synchronous>, transform_indices = @transform_2, window_bounds = array<i64: 200, 1>}, {pipeline_mode = #tpu.pipeline_mode<synchronous>, transform_indices = @transform_3, window_bounds = array<i64: 9, 32>}, {pipeline_mode = #tpu.pipeline_mode<synchronous>, transform_indices = @transform_4, window_bounds = array<i64: 9, 1>}, {transform_indices = @transform_5, window_bounds = array<i64: 9, 128>}]} {
    %c0 = arith.constant 0 : index
    %c0_0 = arith.constant 0 : index
    %0 = vector.load %arg1[%c0, %c0_0] : memref<320x128xf32, #tpu.memory_space<vmem>>, vector<320x128xf32>
    %c0_1 = arith.constant 0 : index
    %c0_2 = arith.constant 0 : index
    %1 = vector.load %arg2[%c0_1, %c0_2] : memref<200x320xf32, #tpu.memory_space<vmem>>, vector<200x320xf32>
    %cst = arith.constant dense<0.000000e+00> : vector<200x128xf32>
    %2 = tpu.matmul %1, %0, %cst {dimension_numbers = #tpu.dot_dimension_numbers<[1], [0], [0], [1], [0, 0, 1, 1], [], []>} : vector<200x320xf32>, vector<320x128xf32>, vector<200x128xf32> -> vector<200x128xf32>
    %c0_3 = arith.constant 0 : index
    %c0_4 = arith.constant 0 : index
    %3 = vector.load %arg3[%c0_3, %c0_4] : memref<200x1xf32, #tpu.memory_space<vmem>>, vector<200x1xf32>
    %4 = vector.broadcast %3 : vector<200x1xf32> to vector<200x128xf32>
    %5 = arith.addf %2, %4 : vector<200x128xf32>
    %cst_5 = arith.constant 0.000000e+00 : f32
    %6 = vector.broadcast %cst_5 : f32 to vector<200x128xf32>
    %7 = arith.cmpf ogt, %5, %6 : vector<200x128xf32>
    %cst_6 = arith.constant 0.000000e+00 : f32
    %8 = vector.broadcast %cst_6 : f32 to vector<200x128xf32>
    %9 = arith.minimumf %5, %8 : vector<200x128xf32>
    %10 = math.exp %9 : vector<200x128xf32>
    %cst_7 = arith.constant 1.000000e+00 : f32
    %11 = vector.broadcast %cst_7 : f32 to vector<200x128xf32>
    %12 = arith.subf %10, %11 : vector<200x128xf32>
    %13 = arith.select %7, %5, %12 : vector<200x128xi1>, vector<200x128xf32>
    %14 = vector.extract_strided_slice %13 {offsets = [0, 0], sizes = [8, 128], strides = [1, 1]} : vector<200x128xf32> to vector<8x128xf32>
    %15 = vector.extract_strided_slice %13 {offsets = [8, 0], sizes = [8, 128], strides = [1, 1]} : vector<200x128xf32> to vector<8x128xf32>
    %16 = arith.maximumf %14, %15 : vector<8x128xf32>
    %17 = vector.extract_strided_slice %13 {offsets = [16, 0], sizes = [8, 128], strides = [1, 1]} : vector<200x128xf32> to vector<8x128xf32>
    %18 = arith.maximumf %16, %17 : vector<8x128xf32>
    %19 = vector.extract_strided_slice %13 {offsets = [24, 0], sizes = [8, 128], strides = [1, 1]} : vector<200x128xf32> to vector<8x128xf32>
    %20 = arith.maximumf %18, %19 : vector<8x128xf32>
    %21 = vector.extract_strided_slice %13 {offsets = [32, 0], sizes = [8, 128], strides = [1, 1]} : vector<200x128xf32> to vector<8x128xf32>
    %22 = arith.maximumf %20, %21 : vector<8x128xf32>
    %23 = vector.extract_strided_slice %13 {offsets = [40, 0], sizes = [8, 128], strides = [1, 1]} : vector<200x128xf32> to vector<8x128xf32>
    %24 = arith.maximumf %22, %23 : vector<8x128xf32>
    %25 = vector.extract_strided_slice %13 {offsets = [48, 0], sizes = [8, 128], strides = [1, 1]} : vector<200x128xf32> to vector<8x128xf32>
    %26 = arith.maximumf %24, %25 : vector<8x128xf32>
    %27 = vector.extract_strided_slice %13 {offsets = [56, 0], sizes = [8, 128], strides = [1, 1]} : vector<200x128xf32> to vector<8x128xf32>
    %28 = arith.maximumf %26, %27 : vector<8x128xf32>
    %29 = vector.extract_strided_slice %13 {offsets = [64, 0], sizes = [8, 128], strides = [1, 1]} : vector<200x128xf32> to vector<8x128xf32>
    %30 = arith.maximumf %28, %29 : vector<8x128xf32>
    %31 = vector.extract_strided_slice %13 {offsets = [72, 0], sizes = [8, 128], strides = [1, 1]} : vector<200x128xf32> to vector<8x128xf32>
    %32 = arith.maximumf %30, %31 : vector<8x128xf32>
    %33 = vector.extract_strided_slice %13 {offsets = [40, 0], sizes = [8, 128], strides = [1, 1]} : vector<200x128xf32> to vector<8x128xf32>
    %34 = vector.extract_strided_slice %13 {offsets = [48, 0], sizes = [8, 128], strides = [1, 1]} : vector<200x128xf32> to vector<8x128xf32>
    %35 = arith.maximumf %33, %34 : vector<8x128xf32>
    %36 = vector.extract_strided_slice %13 {offsets = [56, 0], sizes = [8, 128], strides = [1, 1]} : vector<200x128xf32> to vector<8x128xf32>
    %37 = arith.maximumf %35, %36 : vector<8x128xf32>
    %38 = vector.extract_strided_slice %13 {offsets = [64, 0], sizes = [8, 128], strides = [1, 1]} : vector<200x128xf32> to vector<8x128xf32>
    %39 = arith.maximumf %37, %38 : vector<8x128xf32>
    %40 = vector.extract_strided_slice %13 {offsets = [72, 0], sizes = [8, 128], strides = [1, 1]} : vector<200x128xf32> to vector<8x128xf32>
    %41 = arith.maximumf %39, %40 : vector<8x128xf32>
    %42 = vector.extract_strided_slice %13 {offsets = [80, 0], sizes = [8, 128], strides = [1, 1]} : vector<200x128xf32> to vector<8x128xf32>
    %43 = arith.maximumf %41, %42 : vector<8x128xf32>
    %44 = vector.extract_strided_slice %13 {offsets = [88, 0], sizes = [8, 128], strides = [1, 1]} : vector<200x128xf32> to vector<8x128xf32>
    %45 = arith.maximumf %43, %44 : vector<8x128xf32>
    %46 = vector.extract_strided_slice %13 {offsets = [96, 0], sizes = [8, 128], strides = [1, 1]} : vector<200x128xf32> to vector<8x128xf32>
    %47 = arith.maximumf %45, %46 : vector<8x128xf32>
    %48 = vector.extract_strided_slice %13 {offsets = [104, 0], sizes = [8, 128], strides = [1, 1]} : vector<200x128xf32> to vector<8x128xf32>
    %49 = arith.maximumf %47, %48 : vector<8x128xf32>
    %50 = vector.extract_strided_slice %13 {offsets = [112, 0], sizes = [8, 128], strides = [1, 1]} : vector<200x128xf32> to vector<8x128xf32>
    %51 = arith.maximumf %49, %50 : vector<8x128xf32>
    %52 = vector.extract_strided_slice %13 {offsets = [80, 0], sizes = [8, 128], strides = [1, 1]} : vector<200x128xf32> to vector<8x128xf32>
    %53 = vector.extract_strided_slice %13 {offsets = [88, 0], sizes = [8, 128], strides = [1, 1]} : vector<200x128xf32> to vector<8x128xf32>
    %54 = arith.maximumf %52, %53 : vector<8x128xf32>
    %55 = vector.extract_strided_slice %13 {offsets = [96, 0], sizes = [8, 128], strides = [1, 1]} : vector<200x128xf32> to vector<8x128xf32>
    %56 = arith.maximumf %54, %55 : vector<8x128xf32>
    %57 = vector.extract_strided_slice %13 {offsets = [104, 0], sizes = [8, 128], strides = [1, 1]} : vector<200x128xf32> to vector<8x128xf32>
    %58 = arith.maximumf %56, %57 : vector<8x128xf32>
    %59 = vector.extract_strided_slice %13 {offsets = [112, 0], sizes = [8, 128], strides = [1, 1]} : vector<200x128xf32> to vector<8x128xf32>
    %60 = arith.maximumf %58, %59 : vector<8x128xf32>
    %61 = vector.extract_strided_slice %13 {offsets = [120, 0], sizes = [8, 128], strides = [1, 1]} : vector<200x128xf32> to vector<8x128xf32>
    %62 = arith.maximumf %60, %61 : vector<8x128xf32>
    %63 = vector.extract_strided_slice %13 {offsets = [128, 0], sizes = [8, 128], strides = [1, 1]} : vector<200x128xf32> to vector<8x128xf32>
    %64 = arith.maximumf %62, %63 : vector<8x128xf32>
    %65 = vector.extract_strided_slice %13 {offsets = [136, 0], sizes = [8, 128], strides = [1, 1]} : vector<200x128xf32> to vector<8x128xf32>
    %66 = arith.maximumf %64, %65 : vector<8x128xf32>
    %67 = vector.extract_strided_slice %13 {offsets = [144, 0], sizes = [8, 128], strides = [1, 1]} : vector<200x128xf32> to vector<8x128xf32>
    %68 = arith.maximumf %66, %67 : vector<8x128xf32>
    %69 = vector.extract_strided_slice %13 {offsets = [152, 0], sizes = [8, 128], strides = [1, 1]} : vector<200x128xf32> to vector<8x128xf32>
    %70 = arith.maximumf %68, %69 : vector<8x128xf32>
    %71 = vector.extract_strided_slice %13 {offsets = [120, 0], sizes = [8, 128], strides = [1, 1]} : vector<200x128xf32> to vector<8x128xf32>
    %72 = vector.extract_strided_slice %13 {offsets = [128, 0], sizes = [8, 128], strides = [1, 1]} : vector<200x128xf32> to vector<8x128xf32>
    %73 = arith.maximumf %71, %72 : vector<8x128xf32>
    %74 = vector.extract_strided_slice %13 {offsets = [136, 0], sizes = [8, 128], strides = [1, 1]} : vector<200x128xf32> to vector<8x128xf32>
    %75 = arith.maximumf %73, %74 : vector<8x128xf32>
    %76 = vector.extract_strided_slice %13 {offsets = [144, 0], sizes = [8, 128], strides = [1, 1]} : vector<200x128xf32> to vector<8x128xf32>
    %77 = arith.maximumf %75, %76 : vector<8x128xf32>
    %78 = vector.extract_strided_slice %13 {offsets = [152, 0], sizes = [8, 128], strides = [1, 1]} : vector<200x128xf32> to vector<8x128xf32>
    %79 = arith.maximumf %77, %78 : vector<8x128xf32>
    %80 = vector.extract_strided_slice %13 {offsets = [160, 0], sizes = [8, 128], strides = [1, 1]} : vector<200x128xf32> to vector<8x128xf32>
    %81 = arith.maximumf %79, %80 : vector<8x128xf32>
    %82 = vector.extract_strided_slice %13 {offsets = [168, 0], sizes = [8, 128], strides = [1, 1]} : vector<200x128xf32> to vector<8x128xf32>
    %83 = arith.maximumf %81, %82 : vector<8x128xf32>
    %84 = vector.extract_strided_slice %13 {offsets = [176, 0], sizes = [8, 128], strides = [1, 1]} : vector<200x128xf32> to vector<8x128xf32>
    %85 = arith.maximumf %83, %84 : vector<8x128xf32>
    %86 = vector.extract_strided_slice %13 {offsets = [184, 0], sizes = [8, 128], strides = [1, 1]} : vector<200x128xf32> to vector<8x128xf32>
    %87 = arith.maximumf %85, %86 : vector<8x128xf32>
    %88 = vector.extract_strided_slice %13 {offsets = [192, 0], sizes = [8, 128], strides = [1, 1]} : vector<200x128xf32> to vector<8x128xf32>
    %89 = arith.maximumf %87, %88 : vector<8x128xf32>
    %90 = tpu.concatenate %32, %51, %70, %89 in 0 : vector<8x128xf32>, vector<8x128xf32>, vector<8x128xf32>, vector<8x128xf32> -> vector<32x128xf32>
    %c0_8 = arith.constant 0 : index
    %c0_9 = arith.constant 0 : index
    %91 = vector.load %arg4[%c0_8, %c0_9] : memref<9x32xf32, #tpu.memory_space<vmem>>, vector<9x32xf32>
    %cst_10 = arith.constant dense<0.000000e+00> : vector<9x128xf32>
    %92 = tpu.matmul %91, %90, %cst_10 {dimension_numbers = #tpu.dot_dimension_numbers<[1], [0], [0], [1], [0, 0, 1, 1], [], []>} : vector<9x32xf32>, vector<32x128xf32>, vector<9x128xf32> -> vector<9x128xf32>
    %c0_11 = arith.constant 0 : index
    %c0_12 = arith.constant 0 : index
    %93 = vector.load %arg5[%c0_11, %c0_12] : memref<9x1xf32, #tpu.memory_space<vmem>>, vector<9x1xf32>
    %94 = vector.broadcast %93 : vector<9x1xf32> to vector<9x128xf32>
    %95 = arith.addf %92, %94 : vector<9x128xf32>
    %cst_13 = arith.constant dense<0xFF800000> : vector<128xf32>
    %96 = vector.multi_reduction <maximumf>, %95, %cst_13 [0] : vector<9x128xf32> to vector<128xf32>
    %97 = vector.shape_cast %96 : vector<128xf32> to vector<1x128xf32>
    %98 = vector.broadcast %97 : vector<1x128xf32> to vector<9x128xf32>
    %99 = arith.subf %95, %98 : vector<9x128xf32>
    %100 = math.exp %99 : vector<9x128xf32>
    %cst_14 = arith.constant dense<0.000000e+00> : vector<128xf32>
    %101 = vector.multi_reduction <add>, %100, %cst_14 [0] : vector<9x128xf32> to vector<128xf32>
    %102 = vector.shape_cast %101 : vector<128xf32> to vector<1x128xf32>
    %103 = math.log %102 : vector<1x128xf32>
    %104 = arith.addf %97, %103 : vector<1x128xf32>
    %105 = vector.broadcast %104 : vector<1x128xf32> to vector<9x128xf32>
    %106 = arith.subf %95, %105 : vector<9x128xf32>
    %c0_15 = arith.constant 0 : index
    %c0_16 = arith.constant 0 : index
    %107 = vector.load %arg6[%c0_15, %c0_16] : memref<9x128xf32, #tpu.memory_space<vmem>>, vector<9x128xf32>
    tpu.vector_store %arg6[%c0_15, %c0_16], %106 {strides = array<i32>} : memref<9x128xf32, #tpu.memory_space<vmem>>, vector<9x128xf32>,
    return
  }
  func.func @transform_0(%arg0: i32) -> (i32, i32) {
    %c0_i32 = arith.constant 0 : i32
    %c0_i32_0 = arith.constant 0 : i32
    return %c0_i32, %arg0 : i32, i32
  }
  func.func @transform_1(%arg0: i32) -> (i32, i32) {
    %c0_i32 = arith.constant 0 : i32
    %c0_i32_0 = arith.constant 0 : i32
    %c0_i32_1 = arith.constant 0 : i32
    return %c0_i32, %c0_i32_0 : i32, i32
  }
  func.func @transform_2(%arg0: i32) -> (i32, i32) {
    %c0_i32 = arith.constant 0 : i32
    %c0_i32_0 = arith.constant 0 : i32
    %c0_i32_1 = arith.constant 0 : i32
    return %c0_i32, %c0_i32_0 : i32, i32
  }
  func.func @transform_3(%arg0: i32) -> (i32, i32) {
    %c0_i32 = arith.constant 0 : i32
    %c0_i32_0 = arith.constant 0 : i32
    %c0_i32_1 = arith.constant 0 : i32
    return %c0_i32, %c0_i32_0 : i32, i32
  }
  func.func @transform_4(%arg0: i32) -> (i32, i32) {
    %c0_i32 = arith.constant 0 : i32
    %c0_i32_0 = arith.constant 0 : i32
    %c0_i32_1 = arith.constant 0 : i32
    return %c0_i32, %c0_i32_0 : i32, i32
  }
  func.func @transform_5(%arg0: i32) -> (i32, i32) {
    %c0_i32 = arith.constant 0 : i32
    %c0_i32_0 = arith.constant 0 : i32
    return %c0_i32, %arg0 : i32, i32
  }
}

</mosaic_0001>

<bundles_post_ra>
// kernel: shallow_cnn_forward.1
= control target key start
LH: loop header
LB: loop body
LE: loop exit
PB: predicated region body
PF: predicated region fallthrough
CT: control target
= control target key end

     0   :  { %v1430_v0 = vmov 0.0|0.0   ;;  %vm1431_vm0 = vmmov 0   ;;  %v1432_v6 = vmov 0.0   ;;  %v1433_v7 = vmov 0   ;;  %s2181_s0 = inlined_call_operand.vmem [shape: f32[320,128], index: 0, kind: input, shape index: {}]   ;;  %s2182_s1 = inlined_call_operand.vmem [shape: f32[200,320], index: 1, kind: input, shape index: {}]   ;;  %s2183_s2 = inlined_call_operand.vmem [shape: f32[200,1], index: 2, kind: input, shape index: {}]   ;;  %s2184_s4 = inlined_call_operand.vmem [shape: f32[9,1], index: 4, kind: input, shape index: {}]   ;;  %s2185_s3 = inlined_call_operand.vmem [shape: f32[9,32], index: 3, kind: input, shape index: {}]   ;;  %s2186_s5 = inlined_call_operand.vmem [shape: f32[9,128], index: 5, kind: output, shape index: {}]  }
   0x1   :  { %1250 = vmatprep.subr.bf16.mxu0 %v1430_v0  ;;  %v20_v1 = vld [vmem:[%s2181_s0] sm:$0xff]  ;;  %v21_v2 = vld [vmem:[%s2181_s0 + $0x8] sm:$0xff]  ;;  %v22_v3 = vld [vmem:[%s2181_s0 + $0x10] sm:$0xff]  ;;  %1298 = vmatprep.subr.bf16.mxu1 %v1430_v0  ;;  %vm285_vm1 = vcmask 523264   ;;  %vm941_vm2 = vcmask 261120  }
   0x2   :  { %v1251_v4 = vpack.c.bf16 %v21_v2, %v20_v1  ;;  %v23_v5 = vld [vmem:[%s2181_s0 + $0x18] sm:$0xff]  ;;  %1164 = vmatprep.mubr.msk.f32.mxu1 %vm1431_vm0, %v1432_v6  ;;  %1372 = vset.pattern.permute.xlu0 %v1433_v7  ;;  %v24_v9 = vld [vmem:[%s2181_s0 + $0x20] sm:$0xff]  ;;  %v25_v10 = vld [vmem:[%s2181_s0 + $0x28] sm:$0xff] }
   0x3   :  { %1373 = vset.pattern.permute.xlu1 %v1433_v7  ;;  %v1254_v8 = vpack.c.bf16 %v23_v5, %v22_v3  ;;  %v1257_v11 = vpack.c.bf16 %v25_v10, %v24_v9  ;;  %v26_v12 = vld [vmem:[%s2181_s0 + $0x30] sm:$0xff]  ;;  %v27_v13 = vld [vmem:[%s2181_s0 + $0x38] sm:$0xff]  ;;  %v52_v14 = vld [vmem:[%s2181_s0 + $0x100] sm:$0xff] }
   0x4   :  { %1252 = vmatpush1.bf16.msra.mxu0 %v1251_v4  ;;  %v53_v15 = vld [vmem:[%s2181_s0 + $0x108] sm:$0xff]  ;;  %v54_v17 = vld [vmem:[%s2181_s0 + $0x110] sm:$0xff]  ;;  %v55_v18 = vld [vmem:[%s2181_s0 + $0x118] sm:$0xff]  ;;  %v1260_v19 = vpack.c.bf16 %v27_v13, %v26_v12 }
   0x5   :  { %1253 = vmatprep.subr.bf16.mxu0 %v1430_v0  ;;  %v1299_v16 = vpack.c.bf16 %v53_v15, %v52_v14  ;;  %v28_v20 = vld [vmem:[%s2181_s0 + $0x40] sm:$0xff]  ;;  %v29_v21 = vld [vmem:[%s2181_s0 + $0x48] sm:$0xff]  ;;  %v1302_v22 = vpack.c.bf16 %v55_v18, %v54_v17  ;;  %v30_v27 = vld [vmem:[%s2181_s0 + $0x50] sm:$0xff] }
   0x6   :  { %v56_v23 = vld [vmem:[%s2181_s0 + $0x120] sm:$0xff]  ;;  %v57_v24 = vld [vmem:[%s2181_s0 + $0x128] sm:$0xff]  ;;  %v1263_v26 = vpack.c.bf16 %v29_v21, %v28_v20  ;;  %v31_v28 = vld [vmem:[%s2181_s0 + $0x58] sm:$0xff] }
   0x7   :  { %1300 = vmatpush3.bf16.msra.mxu1 %v1299_v16  ;;  %v61_v25 = vld [vmem:[%s2182_s1 + $0x8] sm:$0xff]  ;;  %v1305_v29 = vpack.c.bf16 %v57_v24, %v56_v23  ;;  %v58_v30 = vld [vmem:[%s2181_s0 + $0x130] sm:$0xff]  ;;  %v59_v31 = vld [vmem:[%s2181_s0 + $0x138] sm:$0xff]  ;;  %v1266_v32 = vpack.c.bf16 %v31_v28, %v30_v27 }
   0x8   :  { %1255 = vmatpush1.bf16.msra.mxu0 %v1254_v8  ;;  %1301 = vmatprep.subr.bf16.mxu1 %v1430_v0  ;;  %v32_v33 = vld [vmem:[%s2181_s0 + $0x60] sm:$0xff]  ;;  %v33_v34 = vld [vmem:[%s2181_s0 + $0x68] sm:$0xff]  ;;  %v1308_v35 = vpack.c.bf16 %v59_v31, %v58_v30  ;;  %v34_v37 = vld [vmem:[%s2181_s0 + $0x70] sm:$0xff] }
   0x9   :  { %1256 = vmatprep.subr.bf16.mxu0 %v1430_v0  ;;  %425 = vmatprep.mubr.f32.mxu0 %v61_v25  ;;  %v1269_v36 = vpack.c.bf16 %v33_v34, %v32_v33  ;;  %v35_v38 = vld [vmem:[%s2181_s0 + $0x78] sm:$0xff]  ;;  %v62_v39 = vld [vmem:[%s2182_s1 + $0x10] sm:$0xff]  ;;  %v135_v40 = vld [vmem:[%s2183_s2] sm:$0xff] }
   0xa   :  { %v1272_v41 = vpack.c.bf16 %v35_v38, %v34_v37  ;;  %v36_v42 = vld [vmem:[%s2181_s0 + $0x80] sm:$0xff]  ;;  %v37_v43 = vld [vmem:[%s2181_s0 + $0x88] sm:$0xff]  ;;  %162 = vperm.xlu0 %1372, %v135_v40   ;;  %v141_v48 = vld [vmem:[%s2183_s2 + $0x30] sm:$0xff] }
   0xb   :  { %1303 = vmatpush3.bf16.msra.mxu1 %v1302_v22  ;;  %v65_v44 = vld [vmem:[%s2182_s1 + $0x28] sm:$0xff]  ;;  %v1275_v47 = vpack.c.bf16 %v37_v43, %v36_v42  ;;  %v38_v49 = vld [vmem:[%s2181_s0 + $0x90] sm:$0xff]  ;;  %v39_v50 = vld [vmem:[%s2181_s0 + $0x98] sm:$0xff] }
   0xc   :  { %1258 = vmatpush1.bf16.msra.mxu0 %v1257_v11  ;;  %1304 = vmatprep.subr.bf16.mxu1 %v1430_v0  ;;  %v140_v45 = vld [vmem:[%s2183_s2 + $0x28] sm:$0xff]  ;;  %v68_v51 = vld [vmem:[%s2182_s1 + $0x40] sm:$0xff]  ;;  %v137_v52 = vld [vmem:[%s2183_s2 + $0x10] sm:$0xff]  ;;  %v1278_v53 = vpack.c.bf16 %v39_v50, %v38_v49 }
   0xd   :  { %1259 = vmatprep.subr.bf16.mxu0 %v1430_v0  ;;  %v136_v46 = vld [vmem:[%s2183_s2 + $0x8] sm:$0xff]  ;;  %187 = vperm.xlu1 %1373, %v140_v45   ;;  %v142_v54 = vld [vmem:[%s2183_s2 + $0x38] sm:$0xff]  ;;  %v40_v55 = vld [vmem:[%s2181_s0 + $0xa0] sm:$0xff] }
   0xe   :  { %167 = vperm.xlu0 %1372, %v136_v46   ;;  %v41_v56 = vld [vmem:[%s2181_s0 + $0xa8] sm:$0xff]  ;;  %v71_v57 = vld [vmem:[%s2182_s1 + $0x58] sm:$0xff]  ;;  %v143_v60 = vld [vmem:[%s2183_s2 + $0x40] sm:$0xff] }
   0xf   :  { %1306 = vmatpush3.bf16.msra.mxu1 %v1305_v29  ;;  %v138_v58 = vld [vmem:[%s2183_s2 + $0x18] sm:$0xff]  ;;  %v1281_v59 = vpack.c.bf16 %v41_v56, %v40_v55  ;;  %v42_v61 = vld [vmem:[%s2181_s0 + $0xb0] sm:$0xff]  ;;  %v44_v4 = vld [vmem:[%s2181_s0 + $0xc0] sm:$0xff] }
  0x10   :  { %1261 = vmatpush1.bf16.msra.mxu0 %v1260_v19  ;;  %1307 = vmatprep.subr.bf16.mxu1 %v1430_v0  ;;  %v43_v62 = vld [vmem:[%s2181_s0 + $0xb8] sm:$0xff]  ;;  %v74_v63 = vld [vmem:[%s2182_s1 + $0x70] sm:$0xff]  ;;  %v45_v5 = vld [vmem:[%s2181_s0 + $0xc8] sm:$0xff] }
  0x11   :  { %1262 = vmatprep.subr.bf16.mxu0 %v1430_v0  ;;  %192 = vperm.xlu1 %1373, %v141_v48   ;;  %v145_v1 = vld [vmem:[%s2183_s2 + $0x50] sm:$0xff]  ;;  %v1284_v2 = vpack.c.bf16 %v43_v62, %v42_v61  ;;  %v146_v3 = vld [vmem:[%s2183_s2 + $0x58] sm:$0xff]  ;;  %v77_v7 = vld [vmem:[%s2182_s1 + $0x88] sm:$0xff]  ;;  %v1287_v9 = vpack.c.bf16 %v45_v5, %v44_v4 }
  0x12   :  { %172 = vperm.xlu0 %1372, %v137_v52   ;;  %v150_v8 = vld [vmem:[%s2183_s2 + $0x78] sm:$0xff]  ;;  %v151_v10 = vld [vmem:[%s2183_s2 + $0x80] sm:$0xff]  ;;  %v46_v11 = vld [vmem:[%s2181_s0 + $0xd0] sm:$0xff] }
  0x13   :  { %1309 = vmatpush3.bf16.msra.mxu1 %v1308_v35  ;;  %v47_v12 = vld [vmem:[%s2181_s0 + $0xd8] sm:$0xff]  ;;  %v80_v13 = vld [vmem:[%s2182_s1 + $0xa0] sm:$0xff]  ;;  %v144_v16 = vld [vmem:[%s2183_s2 + $0x48] sm:$0xff] }
  0x14   :  { %1264 = vmatpush1.bf16.msra.mxu0 %v1263_v26  ;;  %v139_v14 = vld [vmem:[%s2183_s2 + $0x20] sm:$0xff]  ;;  %v1290_v15 = vpack.c.bf16 %v47_v12, %v46_v11  ;;  %v49_v18 = vld [vmem:[%s2181_s0 + $0xe8] sm:$0xff]  ;;  %v83_v19 = vld [vmem:[%s2182_s1 + $0xb8] sm:$0xff] }
  0x15   :  { %1265 = vmatprep.subr.bf16.mxu0 %v1430_v0  ;;  %197 = vperm.xlu1 %1373, %v142_v54   ;;  %v48_v17 = vld [vmem:[%s2181_s0 + $0xe0] sm:$0xff]  ;;  %v152_v22 = vld [vmem:[%s2183_s2 + $0x88] sm:$0xff]  ;;  %v50_v23 = vld [vmem:[%s2181_s0 + $0xf0] sm:$0xff] }
  0x16   :  { %1165 = vmatmul.mubr.msk.f32.vlgmr.msra.gmra.mrb[0].mxu1 %vm285_vm1, %v62_v39  ;;  %177 = vperm.xlu0 %1372, %v138_v58   ;;  %v147_v20 = vld [vmem:[%s2183_s2 + $0x60] sm:$0xff]  ;;  %v1293_v21 = vpack.c.bf16 %v49_v18, %v48_v17  ;;  %v51_v24 = vld [vmem:[%s2181_s0 + $0xf8] sm:$0xff]  ;;  %v86_v25 = vld [vmem:[%s2182_s1 + $0xd0] sm:$0xff] }
  0x17   :  { %1167 = vmatprep.mubr.msk.f32.mxu1 %vm1431_vm0, %v1432_v6  ;;  %v148_v26 = vld [vmem:[%s2183_s2 + $0x68] sm:$0xff]  ;;  %v1296_v27 = vpack.c.bf16 %v51_v24, %v50_v23  ;;  %v153_v28 = vld [vmem:[%s2183_s2 + $0x90] sm:$0xff]  ;;  %v60_v31 = vld [vmem:[%s2182_s1] sm:$0xff] }
  0x18   :  { %1267 = vmatpush1.bf16.msra.mxu0 %v1266_v32  ;;  %v89_v29 = vld [vmem:[%s2182_s1 + $0xe8] sm:$0xff]  ;;  %v149_v30 = vld [vmem:[%s2183_s2 + $0x70] sm:$0xff]  ;;  %v64_v32 = vld [vmem:[%s2182_s1 + $0x20] sm:$0xff] }
  0x19   :  { %1268 = vmatprep.subr.bf16.mxu0 %v1430_v0  ;;  %202 = vperm.xlu1 %1373, %v143_v60   ;;  %v92_v33 = vld [vmem:[%s2182_s1 + $0x100] sm:$0xff]  ;;  %v63_v35 = vld [vmem:[%s2182_s1 + $0x18] sm:$0xff]  ;;  %v157_v39 = vld [vmem:[%s2183_s2 + $0xb0] sm:$0xff] }
  0x1a   :  { %1168 = vmatmul.mubr.msk.f32.gmra.mrb[2].mxu1 %vm285_vm1, %v65_v44  ;;  %212 = vperm.xlu0 %1372, %v145_v1   ;;  %v155_v34 = vld [vmem:[%s2183_s2 + $0xa0] sm:$0xff]  ;;  %v67_v37 = vld [vmem:[%s2182_s1 + $0x38] sm:$0xff]  ;;  %v66_v40 = vld [vmem:[%s2182_s1 + $0x30] sm:$0xff] }
  0x1b   :  { %1170 = vmatprep.mubr.msk.f32.mxu1 %vm1431_vm0, %v1432_v6  ;;  %v95_v38 = vld [vmem:[%s2182_s1 + $0x118] sm:$0xff]  ;;  %v70_v42 = vld [vmem:[%s2182_s1 + $0x50] sm:$0xff]  ;;  %v159_v44 = vld [vmem:[%s2183_s2 + $0xc0] sm:$0xff] }
  0x1c   :  { %1270 = vmatpush1.bf16.msra.mxu0 %v1269_v36  ;;  %v156_v36 = vld [vmem:[%s2183_s2 + $0xa8] sm:$0xff]  ;;  %v98_v43 = vld [vmem:[%s2182_s1 + $0x130] sm:$0xff]  ;;  %v929_v49 = vld [vmem:[%s2184_s4] sm:$0xff] }
  0x1d   :  { %1271 = vmatprep.subr.bf16.mxu0 %v1430_v0  ;;  %217 = vperm.xlu1 %1373, %v146_v3   ;;  %v69_v45 = vld [vmem:[%s2182_s1 + $0x48] sm:$0xff]  ;;  %v72_v50 = vld [vmem:[%s2182_s1 + $0x60] sm:$0xff]  ;;  %v79_v54 = vld [vmem:[%s2182_s1 + $0x98] sm:$0xff] }
  0x1e   :  { %1171 = vmatmul.mubr.msk.f32.gmra.mrb[4].mxu1 %vm285_vm1, %v68_v51  ;;  %237 = vperm.xlu0 %1372, %v150_v8   ;;  %v930_v46 = vld [vmem:[%s2184_s4 + $0x8] sm:$0x1]  ;;  %v76_v51 = vld [vmem:[%s2182_s1 + $0x80] sm:$0xff]  ;;  %v107_v55 = vld [vmem:[%s2182_s1 + $0x178] sm:$0xff] }
  0x1f   :  { %1173 = vmatprep.mubr.msk.f32.mxu1 %vm1431_vm0, %v1432_v6  ;;  %v101_v48 = vld [vmem:[%s2182_s1 + $0x148] sm:$0xff]  ;;  %v104_v52 = vld [vmem:[%s2182_s1 + $0x160] sm:$0xff]  ;;  %v78_v56 = vld [vmem:[%s2182_s1 + $0x90] sm:$0xff] }
  0x20   :  { %1273 = vmatpush1.bf16.msra.mxu0 %v1272_v41  ;;  %v158_v41 = vld [vmem:[%s2183_s2 + $0xb8] sm:$0xff]  ;;  %v110_v58 = vld [vmem:[%s2182_s1 + $0x190] sm:$0xff]  ;;  %v85_v60 = vld [vmem:[%s2182_s1 + $0xc8] sm:$0xff] }
  0x21   :  { %1274 = vmatprep.subr.bf16.mxu0 %v1430_v0  ;;  %242 = vperm.xlu1 %1373, %v151_v10   ;;  %v113_v61 = vld [vmem:[%s2182_s1 + $0x1a8] sm:$0xff]  ;;  %v84_v62 = vld [vmem:[%s2182_s1 + $0xc0] sm:$0xff]  ;;  %v91_v3 = vld [vmem:[%s2182_s1 + $0xf8] sm:$0xff] }
  0x22   :  { %1174 = vmatmul.mubr.msk.f32.gmra.mrb[6].mxu1 %vm285_vm1, %v71_v57  ;;  %182 = vperm.xlu0 %1372, %v139_v14   ;;  %v82_v57 = vld [vmem:[%s2182_s1 + $0xb0] sm:$0xff]  ;;  %v116_v1 = vld [vmem:[%s2182_s1 + $0x1c0] sm:$0xff]  ;;  %v119_v4 = vld [vmem:[%s2182_s1 + $0x1d8] sm:$0xff] }
  0x23   :  { %1176 = vmatprep.mubr.msk.f32.mxu1 %vm1431_vm0, %v1432_v6  ;;  %v90_v5 = vld [vmem:[%s2182_s1 + $0xf0] sm:$0xff]  ;;  %v97_v10 = vld [vmem:[%s2182_s1 + $0x128] sm:$0xff]  ;;  %v96_v12 = vld [vmem:[%s2182_s1 + $0x120] sm:$0xff] }
  0x24   :  { %1276 = vmatpush1.bf16.msra.mxu0 %v1275_v47  ;;  %v73_v47 = vld [vmem:[%s2182_s1 + $0x68] sm:$0xff]  ;;  %v122_v8 = vld [vmem:[%s2182_s1 + $0x1f0] sm:$0xff]  ;;  %v128_v14 = vld [vmem:[%s2182_s1 + $0x220] sm:$0xff] }
  0x25   :  { %1277 = vmatprep.subr.bf16.mxu0 %v1430_v0  ;;  %207 = vperm.xlu1 %1373, %v144_v16   ;;  %v125_v11 = vld [vmem:[%s2182_s1 + $0x208] sm:$0xff]  ;;  %v103_v16 = vld [vmem:[%s2182_s1 + $0x158] sm:$0xff]  ;;  %v102_v18 = vld [vmem:[%s2182_s1 + $0x150] sm:$0xff] }
  0x26   :  { %1177 = vmatmul.mubr.msk.f32.gmra.mrb[8].mxu1 %vm285_vm1, %v74_v63  ;;  %222 = vperm.xlu0 %1372, %v147_v20   ;;  %v88_v63 = vld [vmem:[%s2182_s1 + $0xe0] sm:$0xff]  ;;  %v131_v17 = vld [vmem:[%s2182_s1 + $0x238] sm:$0xff]  ;;  %v134_v20 = vld [vmem:[%s2182_s1 + $0x250] sm:$0xff] }
  0x27   :  { %1179 = vmatprep.mubr.msk.f32.mxu1 %vm1431_vm0, %v1432_v6  ;;  %v112_v23 = vld [vmem:[%s2182_s1 + $0x1a0] sm:$0xff]  ;;  %v111_v24 = vld [vmem:[%s2182_s1 + $0x198] sm:$0xff] }
  0x28   :  { %1279 = vmatpush1.bf16.msra.mxu0 %v1278_v53  ;;  %v75_v53 = vld [vmem:[%s2182_s1 + $0x78] sm:$0xff] }
  0x29   :  { %1280 = vmatprep.subr.bf16.mxu0 %v1430_v0  ;;  %247 = vperm.xlu1 %1373, %v152_v22   ;;  %v109_v22 = vld [vmem:[%s2182_s1 + $0x188] sm:$0xff] }
  0x2a   :  { %1180 = vmatmul.mubr.msk.f32.gmra.mrb[10].mxu1 %vm285_vm1, %v77_v7  ;;  %227 = vperm.xlu0 %1372, %v148_v26   ;;  %v94_v7 = vld [vmem:[%s2182_s1 + $0x110] sm:$0xff] }
  0x2b   :  { %1182 = vmatprep.mubr.msk.f32.mxu1 %vm1431_vm0, %v1432_v6  ;;  %v114_v26 = vld [vmem:[%s2182_s1 + $0x1b0] sm:$0xff] }
  0x2c   :  { %1282 = vmatpush1.bf16.msra.mxu0 %v1281_v59  ;;  %v81_v59 = vld [vmem:[%s2182_s1 + $0xa8] sm:$0xff] }
  0x2d   :  { %1283 = vmatprep.subr.bf16.mxu0 %v1430_v0  ;;  %252 = vperm.xlu1 %1373, %v153_v28   ;;  %v117_v28 = vld [vmem:[%s2182_s1 + $0x1c8] sm:$0xff] }
  0x2e   :  { %1183 = vmatmul.mubr.msk.f32.gmra.mrb[12].mxu1 %vm285_vm1, %v80_v13  ;;  %232 = vperm.xlu0 %1372, %v149_v30   ;;  %v100_v13 = vld [vmem:[%s2182_s1 + $0x140] sm:$0xff] }
  0x2f   :  { %1185 = vmatprep.mubr.msk.f32.mxu1 %vm1431_vm0, %v1432_v6  ;;  %v120_v30 = vld [vmem:[%s2182_s1 + $0x1e0] sm:$0xff] }
  0x30   :  { %1285 = vmatpush1.bf16.msra.mxu0 %v1284_v2  ;;  %v87_v2 = vld [vmem:[%s2182_s1 + $0xd8] sm:$0xff] }
  0x31   :  { %1286 = vmatprep.subr.bf16.mxu0 %v1430_v0 }
  0x32   :  { %1186 = vmatmul.mubr.msk.f32.gmra.mrb[14].mxu1 %vm285_vm1, %v83_v19  ;;  %262 = vperm.xlu0 %1372, %v155_v34   ;;  %v106_v19 = vld [vmem:[%s2182_s1 + $0x170] sm:$0xff] }
  0x33   :  { %1188 = vmatprep.mubr.msk.f32.mxu1 %vm1431_vm0, %v1432_v6  ;;  %v130_v34 = vld [vmem:[%s2182_s1 + $0x230] sm:$0xff] }
  0x34   :  { %1288 = vmatpush1.bf16.msra.mxu0 %v1287_v9  ;;  %v93_v9 = vld [vmem:[%s2182_s1 + $0x108] sm:$0xff] }
  0x35   :  { %1289 = vmatprep.subr.bf16.mxu0 %v1430_v0 }
  0x36   :  { %1189 = vmatmul.mubr.msk.f32.gmra.mrb[16].mxu1 %vm285_vm1, %v86_v25  ;;  %272 = vperm.xlu0 %1372, %v157_v39   ;;  %v115_v25 = vld [vmem:[%s2182_s1 + $0x1b8] sm:$0xff] }
  0x37   :  { %1191 = vmatprep.mubr.msk.f32.mxu1 %vm1431_vm0, %v1432_v6 }
  0x38   :  { %1291 = vmatpush1.bf16.msra.mxu0 %v1290_v15  ;;  %v99_v15 = vld [vmem:[%s2182_s1 + $0x138] sm:$0xff] }
  0x39   :  { %1292 = vmatprep.subr.bf16.mxu0 %v1430_v0 }
  0x3a   :  { %1192 = vmatmul.mubr.msk.f32.gmra.mrb[18].mxu1 %vm285_vm1, %v89_v29  ;;  %282 = vperm.xlu0 %1372, %v159_v44   ;;  %v121_v29 = vld [vmem:[%s2182_s1 + $0x1e8] sm:$0xff] }
  0x3b   :  { %1194 = vmatprep.mubr.msk.f32.mxu1 %vm1431_vm0, %v1432_v6 }
  0x3c   :  { %1294 = vmatpush1.bf16.msra.mxu0 %v1293_v21  ;;  %v105_v21 = vld [vmem:[%s2182_s1 + $0x168] sm:$0xff] }
  0x3d   :  { %1295 = vmatprep.subr.bf16.mxu0 %v1430_v0  ;;  %v154_v0 = vld [vmem:[%s2183_s2 + $0x98] sm:$0xff] }
  0x3e   :  { %257 = vperm.xlu1 %1373, %v154_v0   ;;  %1195 = vmatmul.mubr.msk.f32.gmra.mrb[20].mxu1 %vm285_vm1, %v92_v33  ;;  %v123_v0 = vld [vmem:[%s2182_s1 + $0x1f8] sm:$0xff]  ;;  %v126_v33 = vld [vmem:[%s2182_s1 + $0x210] sm:$0xff] }
  0x3f   :  { %1197 = vmatprep.mubr.msk.f32.mxu1 %vm1431_vm0, %v1432_v6  ;;  %933 = vperm.xlu0 %1372, %v929_v49  }
  0x40   :  { %1297 = vmatpush1.bf16.msra.mxu0 %v1296_v27  ;;  %v118_v27 = vld [vmem:[%s2182_s1 + $0x1d0] sm:$0xff] }
  0x42   :  { %267 = vperm.xlu1 %1373, %v156_v36   ;;  %1198 = vmatmul.mubr.msk.f32.gmra.mrb[22].mxu1 %vm285_vm1, %v95_v38  ;;  %v133_v36 = vld [vmem:[%s2182_s1 + $0x248] sm:$0xff] }
  0x43   :  { %426 = vmatmul.mubr.f32.vlgmr.msra.gmra.mrb[0].mxu0 %v60_v31  ;;  %1200 = vmatprep.mubr.msk.f32.mxu1 %vm1431_vm0, %v1432_v6  ;;  %v124_v31 = vld [vmem:[%s2182_s1 + $0x200] sm:$0xff] }
  0x44   :  { %430 = vmatprep.mubr.f32.mxu0 %v64_v32  ;;  %v127_v32 = vld [vmem:[%s2182_s1 + $0x218] sm:$0xff] }
  0x46   :  { %277 = vperm.xlu1 %1373, %v158_v41   ;;  %1201 = vmatmul.mubr.msk.f32.gmra.mrb[24].mxu1 %vm285_vm1, %v98_v43 }
  0x47   :  { %431 = vmatmul.mubr.f32.gmra.mrb[2].mxu0 %v63_v35  ;;  %1203 = vmatprep.mubr.msk.f32.mxu1 %vm1431_vm0, %v1432_v6  ;;  %v129_v35 = vld [vmem:[%s2182_s1 + $0x228] sm:$0xff] }
  0x48   :  { %435 = vmatprep.mubr.f32.mxu0 %v67_v37  ;;  %v132_v37 = vld [vmem:[%s2182_s1 + $0x240] sm:$0xff] }
  0x4a   :  { %938 = vperm.xlu1 %1373, %v930_v46   ;;  %1204 = vmatmul.mubr.msk.f32.gmra.mrb[26].mxu1 %vm285_vm1, %v101_v48 }
  0x4b   :  { %436 = vmatmul.mubr.f32.gmra.mrb[4].mxu0 %v66_v40  ;;  %1206 = vmatprep.mubr.msk.f32.mxu1 %vm1431_vm0, %v1432_v6 }
  0x4c   :  { %440 = vmatprep.mubr.f32.mxu0 %v70_v42 }
  0x4e   :  { %1207 = vmatmul.mubr.msk.f32.gmra.mrb[28].mxu1 %vm285_vm1, %v104_v52 }
  0x4f   :  { %441 = vmatmul.mubr.f32.gmra.mrb[6].mxu0 %v69_v45  ;;  %1209 = vmatprep.mubr.msk.f32.mxu1 %vm1431_vm0, %v1432_v6 }
  0x50   :  { %445 = vmatprep.mubr.f32.mxu0 %v73_v47 }
  0x52   :  { %1210 = vmatmul.mubr.msk.f32.gmra.mrb[30].mxu1 %vm285_vm1, %v107_v55 }
  0x53   :  { %446 = vmatmul.mubr.f32.gmra.mrb[8].mxu0 %v72_v50  ;;  %1212 = vmatprep.mubr.msk.f32.mxu1 %vm1431_vm0, %v1432_v6 }
  0x54   :  { %450 = vmatprep.mubr.f32.mxu0 %v76_v51 }
  0x56   :  { %1213 = vmatmul.mubr.msk.f32.gmra.mrb[32].mxu1 %vm285_vm1, %v110_v58 }
  0x57   :  { %451 = vmatmul.mubr.f32.gmra.mrb[10].mxu0 %v75_v53  ;;  %1215 = vmatprep.mubr.msk.f32.mxu1 %vm1431_vm0, %v1432_v6 }
  0x58   :  { %455 = vmatprep.mubr.f32.mxu0 %v79_v54 }
  0x5a   :  { %1216 = vmatmul.mubr.msk.f32.gmra.mrb[34].mxu1 %vm285_vm1, %v113_v61  ;;  %v927_v61 = vld [vmem:[%s2185_s3] sm:$0xff] }
  0x5b   :  { %456 = vmatmul.mubr.f32.gmra.mrb[12].mxu0 %v78_v56  ;;  %1218 = vmatprep.mubr.msk.f32.mxu1 %vm1431_vm0, %v1432_v6 }
  0x5c   :  { %460 = vmatprep.mubr.f32.mxu0 %v82_v57 }
  0x5e   :  { %1219 = vmatmul.mubr.msk.f32.gmra.mrb[36].mxu1 %vm285_vm1, %v116_v1 }
  0x5f   :  { %461 = vmatmul.mubr.f32.gmra.mrb[14].mxu0 %v81_v59  ;;  %1221 = vmatprep.mubr.msk.f32.mxu1 %vm1431_vm0, %v1432_v6 }
  0x60   :  { %465 = vmatprep.mubr.f32.mxu0 %v85_v60 }
  0x62   :  { %1222 = vmatmul.mubr.msk.f32.gmra.mrb[38].mxu1 %vm285_vm1, %v119_v4 }
  0x63   :  { %466 = vmatmul.mubr.f32.gmra.mrb[16].mxu0 %v84_v62  ;;  %1224 = vmatprep.mubr.msk.f32.mxu1 %vm1431_vm0, %v1432_v6 }
  0x64   :  { %470 = vmatprep.mubr.f32.mxu0 %v88_v63 }
  0x66   :  { %1225 = vmatmul.mubr.msk.f32.gmra.mrb[40].mxu1 %vm285_vm1, %v122_v8 }
  0x67   :  { %471 = vmatmul.mubr.f32.gmra.mrb[18].mxu0 %v87_v2  ;;  %1227 = vmatprep.mubr.msk.f32.mxu1 %vm1431_vm0, %v1432_v6 }
  0x68   :  { %475 = vmatprep.mubr.f32.mxu0 %v91_v3 }
  0x6a   :  { %1228 = vmatmul.mubr.msk.f32.gmra.mrb[42].mxu1 %vm285_vm1, %v125_v11 }
  0x6b   :  { %476 = vmatmul.mubr.f32.gmra.mrb[20].mxu0 %v90_v5  ;;  %1230 = vmatprep.mubr.msk.f32.mxu1 %vm1431_vm0, %v1432_v6 }
  0x6c   :  { %480 = vmatprep.mubr.f32.mxu0 %v94_v7 }
  0x6e   :  { %1231 = vmatmul.mubr.msk.f32.gmra.mrb[44].mxu1 %vm285_vm1, %v128_v14 }
  0x6f   :  { %481 = vmatmul.mubr.f32.gmra.mrb[22].mxu0 %v93_v9  ;;  %1233 = vmatprep.mubr.msk.f32.mxu1 %vm1431_vm0, %v1432_v6 }
  0x70   :  { %485 = vmatprep.mubr.f32.mxu0 %v97_v10 }
  0x72   :  { %1234 = vmatmul.mubr.msk.f32.gmra.mrb[46].mxu1 %vm285_vm1, %v131_v17 }
  0x73   :  { %486 = vmatmul.mubr.f32.gmra.mrb[24].mxu0 %v96_v12  ;;  %1236 = vmatprep.mubr.msk.f32.mxu1 %vm1431_vm0, %v1432_v6  ;;  %v108_v6 = vld [vmem:[%s2182_s1 + $0x180] sm:$0xff] }
  0x74   :  { %490 = vmatprep.mubr.f32.mxu0 %v100_v13 }
  0x76   :  { %1237 = vmatmul.mubr.msk.f32.gmra.mrb[48].mxu1 %vm285_vm1, %v134_v20 }
  0x77   :  { %491 = vmatmul.mubr.f32.gmra.mrb[26].mxu0 %v99_v15  ;;  %1247 = vmatprep.mubr.msk.f32.mxu1 %vm941_vm2, %v927_v61 }
  0x78   :  { %495 = vmatprep.mubr.f32.mxu0 %v103_v16 }
  0x7b   :  { %496 = vmatmul.mubr.f32.gmra.mrb[28].mxu0 %v102_v18 }
  0x7c   :  { %500 = vmatprep.mubr.f32.mxu0 %v106_v19 }
  0x7f   :  { %501 = vmatmul.mubr.f32.gmra.mrb[30].mxu0 %v105_v21 }
  0x80   :  { %505 = vmatprep.mubr.f32.mxu0 %v109_v22 }
  0x83   :  { %506 = vmatmul.mubr.f32.gmra.mrb[32].mxu0 %v108_v6 }
  0x84   :  { %510 = vmatprep.mubr.f32.mxu0 %v112_v23 }
  0x87   :  { %511 = vmatmul.mubr.f32.gmra.mrb[34].mxu0 %v111_v24 }
  0x88   :  { %515 = vmatprep.mubr.f32.mxu0 %v115_v25 }
  0x89   :  { %v163_v47 = vpop.permute.xlu0 %162 }
  0x8b   :  { %516 = vmatmul.mubr.f32.gmra.mrb[36].mxu0 %v114_v26 }
  0x8c   :  { %520 = vmatprep.mubr.f32.mxu0 %v118_v27  ;;  %v188_v63 = vpop.permute.xlu1 %187 }
  0x8d   :  { %v168_v51 = vpop.permute.xlu0 %167 }
  0x8f   :  { %521 = vmatmul.mubr.f32.gmra.mrb[38].mxu0 %v117_v28 }
  0x90   :  { %525 = vmatprep.mubr.f32.mxu0 %v121_v29  ;;  %v193_v14 = vpop.permute.xlu1 %192 }
  0x91   :  { %v173_v55 = vpop.permute.xlu0 %172 }
  0x93   :  { %526 = vmatmul.mubr.f32.gmra.mrb[40].mxu0 %v120_v30 }
  0x94   :  { %530 = vmatprep.mubr.f32.mxu0 %v124_v31  ;;  %v198_v26 = vpop.permute.xlu1 %197 }
  0x95   :  { %v178_v59 = vpop.permute.xlu0 %177 }
  0x97   :  { %531 = vmatmul.mubr.f32.gmra.mrb[42].mxu0 %v123_v0 }
  0x98   :  { %535 = vmatprep.mubr.f32.mxu0 %v127_v32 }
  0x99   :  { %v2003_v5 = vpop.permute.xlu0 %212 }
  0x9b   :  { %536 = vmatmul.mubr.f32.gmra.mrb[44].mxu0 %v126_v33 }
  0x9c   :  { %540 = vmatprep.mubr.f32.mxu0 %v130_v34 }
  0x9d   :  { %v2010_v18 = vpop.permute.xlu0 %237 }
  0x9f   :  { %541 = vmatmul.mubr.f32.gmra.mrb[46].mxu0 %v129_v35 }
  0xa0   :  { %545 = vmatprep.mubr.f32.mxu0 %v133_v36 }
  0xa1   :  { %v183_v0 = vpop.permute.xlu0 %182 }
  0xa3   :  { %546 = vmatmul.mubr.f32.gmra.mrb[48].mxu0 %v132_v37 }
  0xe9   :  { %v617_v38 = vpop.f32.mrb[0].mxu1 }
  0xea   :  { %v1166_v39 = vpop.f32.mrb[1].mxu1 }
  0xed   :  { %v622_v40 = vpop.f32.mrb[2].mxu1 }
  0xee   :  { %v1169_v41 = vpop.f32.mrb[3].mxu1 }
  0xf1   :  { %v627_v42 = vpop.f32.mrb[4].mxu1 }
  0xf2   :  { %v1172_v43 = vpop.f32.mrb[5].mxu1 }
  0xf5   :  { %v632_v44 = vpop.f32.mrb[6].mxu1 }
  0xf6   :  { %v1175_v45 = vpop.f32.mrb[7].mxu1 }
  0xf9   :  { %v1985_v46 = vpop.f32.mrb[8].mxu1 }
  0xfa   :  { %v1178_v48 = vpop.f32.mrb[9].mxu1 }
  0xfd   :  { %v1987_v49 = vpop.f32.mrb[10].mxu1 }
  0xfe   :  { %v1181_v50 = vpop.f32.mrb[11].mxu1 }
 0x101   :  { %v1989_v52 = vpop.f32.mrb[12].mxu1 }
 0x102   :  { %v1184_v53 = vpop.f32.mrb[13].mxu1 }
 0x105   :  { %v1991_v54 = vpop.f32.mrb[14].mxu1 }
 0x106   :  { %v1187_v56 = vpop.f32.mrb[15].mxu1 }
 0x109   :  { %v1993_v57 = vpop.f32.mrb[16].mxu1 }
 0x10a   :  { %v1190_v58 = vpop.f32.mrb[17].mxu1 }
 0x10d   :  { %v1995_v60 = vpop.f32.mrb[18].mxu1 }
 0x10e   :  { %v1193_v62 = vpop.f32.mrb[19].mxu1 }
 0x111   :  { %v2001_v4 = vpop.f32.mrb[20].mxu1 }
 0x112   :  { %v1196_v7 = vpop.f32.mrb[21].mxu1 }
 0x115   :  { %v2008_v13 = vpop.f32.mrb[22].mxu1 }
 0x116   :  { %v427_v1 = vpop.f32.mrb[0].mxu0  ;;  %v1199_v15 = vpop.f32.mrb[23].mxu1 }
 0x117   :  { %v428_v2 = vadd.f32 %v427_v1, %v163_v47  ;;  %v429_v3 = vpop.f32.mrb[1].mxu0 }
 0x119   :  { %v2005_v8 = vadd.f32 %v617_v38, %v428_v2  ;;  %v2012_v6 = vpop.f32.mrb[24].mxu1 }
 0x11a   :  { %v432_v9 = vpop.f32.mrb[2].mxu0  ;;  %v1202_v23 = vpop.f32.mrb[25].mxu1 }
 0x11b   :  { %v766_v10 = vmin.f32 %v2005_v8, 0.0  ;;  %v433_v11 = vadd.f32 %v432_v9, %v168_v51  ;;  %v434_v12 = vpop.f32.mrb[3].mxu0  ;;  %vm741_vm3 = vcmp.gt.f32.partialorder %v2005_v8, 0.0 }
 0x11d   :  { %v791_v16 = vmul.f32 1.442695, %v766_v10  ;;  %v623_v17 = vadd.f32 %v622_v40, %v433_v11  ;;  %v2014_v31 = vpop.f32.mrb[26].mxu1  ;;  %v203_v40 = vpop.permute.xlu1 %202 }
 0x11e   :  { %v437_v19 = vpop.f32.mrb[4].mxu0  ;;  %v1205_v32 = vpop.f32.mrb[27].mxu1 }
 0x11f   :  { %1374 = vpow2.f32 %v791_v16  ;;  %v767_v20 = vmin.f32 %v623_v17, 0.0  ;;  %v438_v21 = vadd.f32 %v437_v19, %v173_v55  ;;  %v439_v22 = vpop.f32.mrb[5].mxu0  ;;  %vm742_vm4 = vcmp.gt.f32.partialorder %v623_v17, 0.0 }
 0x121   :  { %v793_v24 = vmul.f32 1.442695, %v767_v20  ;;  %v628_v25 = vadd.f32 %v627_v42, %v438_v21  ;;  %v2019_v39 = vpop.f32.mrb[28].mxu1  ;;  %v2030_v61 = vpop.permute.xlu1 %217 }
 0x122   :  { %v442_v27 = vpop.f32.mrb[6].mxu0  ;;  %v1208_v41 = vpop.f32.mrb[29].mxu1 }
 0x123   :  { %1376 = vpow2.f32 %v793_v24  ;;  %v768_v28 = vmin.f32 %v628_v25, 0.0  ;;  %v443_v29 = vadd.f32 %v442_v27, %v178_v59  ;;  %v444_v30 = vpop.f32.mrb[7].mxu0  ;;  %vm743_vm5 = vcmp.gt.f32.partialorder %v628_v25, 0.0 }
 0x125   :  { %v795_v33 = vmul.f32 1.442695, %v768_v28  ;;  %v2016_v34 = vadd.f32 %v632_v44, %v443_v29  ;;  %v2025_v51 = vpop.f32.mrb[30].mxu1  ;;  %v2043_v23 = vpop.permute.xlu1 %242 }
 0x126   :  { %v447_v35 = vpop.f32.mrb[8].mxu0  ;;  %v1211_v55 = vpop.f32.mrb[31].mxu1 }
 0x127   :  { %1378 = vpow2.f32 %v795_v33  ;;  %v769_v36 = vmin.f32 %v2016_v34, 0.0  ;;  %v448_v37 = vadd.f32 %v447_v35, %v183_v0  ;;  %v449_v38 = vpop.f32.mrb[9].mxu0  ;;  %vm744_vm6 = vcmp.gt.f32.partialorder %v2016_v34, 0.0 }
 0x129   :  { %v1375_v42 = vpop.eup %1374  ;;  %v797_v43 = vmul.f32 1.442695, %v769_v36  ;;  %v2022_v45 = vadd.f32 %v1985_v46, %v448_v37  ;;  %v2034_v3 = vpop.f32.mrb[32].mxu1 }
 0x12a   :  { %v452_v47 = vpop.f32.mrb[10].mxu0  ;;  %v1082_v53 = vadd.f32 -1.0, %v1375_v42  ;;  %v1214_v10 = vpop.f32.mrb[33].mxu1 }
 0x12b   :  { %1380 = vpow2.f32 %v797_v43  ;;  %v770_v44 = vmin.f32 %v2022_v45, 0.0  ;;  %v453_v48 = vadd.f32 %v452_v47, %v188_v63  ;;  %v454_v50 = vpop.f32.mrb[11].mxu0  ;;  %v208_v41 = vpop.permute.xlu1 %207  ;;  %vm745_vm7 = vcmp.gt.f32.partialorder %v2022_v45, 0.0 }
 0x12c   :  { %v866_v7 = vsel %vm741_vm3, %v2005_v8, %v1082_v53 }
 0x12d   :  { %v1377_v56 = vpop.eup %1376  ;;  %v799_v58 = vmul.f32 1.442695, %v770_v44  ;;  %v2028_v59 = vadd.f32 %v1987_v49, %v453_v48  ;;  %v2041_v22 = vpop.f32.mrb[34].mxu1 }
 0x12e   :  { %v1083_v46 = vadd.f32 -1.0, %v1377_v56  ;;  %v457_v62 = vpop.f32.mrb[12].mxu0 }
 0x12f   :  { %1382 = vpow2.f32 %v799_v58  ;;  %v771_v63 = vmin.f32 %v2028_v59, 0.0  ;;  %v458_v1 = vadd.f32 %v457_v62, %v193_v14  ;;  %v459_v2 = vpop.f32.mrb[13].mxu0  ;;  %vm746_vm8 = vcmp.gt.f32.partialorder %v2028_v59, 0.0 }
 0x130   :  { %v867_v9 = vsel %vm742_vm4, %v623_v17, %v1083_v46  ;;  %v1217_v17 = vpop.f32.mrb[35].mxu1 }
 0x131   :  { %v1379_v49 = vpop.eup %1378  ;;  %v891_v11 = vmax.f32 %v866_v7, %v867_v9  ;;  %v801_v12 = vmul.f32 1.442695, %v771_v63  ;;  %v2038_v15 = vadd.f32 %v1989_v52, %v458_v1  ;;  %v2050_v33 = vpop.f32.mrb[36].mxu1 }
 0x132   :  { %v1084_v16 = vadd.f32 -1.0, %v1379_v49  ;;  %v462_v19 = vpop.f32.mrb[14].mxu0  ;;  %v1220_v35 = vpop.f32.mrb[37].mxu1 }
 0x133   :  { %1384 = vpow2.f32 %v801_v12  ;;  %v772_v20 = vmin.f32 %v2038_v15, 0.0  ;;  %v463_v14 = vadd.f32 %v462_v19, %v198_v26  ;;  %v464_v21 = vpop.f32.mrb[15].mxu0  ;;  %vm747_vm9 = vcmp.gt.f32.partialorder %v2038_v15, 0.0 }
 0x134   :  { %v868_v8 = vsel %vm743_vm5, %v628_v25, %v1084_v16 }
 0x135   :  { %v1381_v24 = vpop.eup %1380  ;;  %v892_v27 = vmax.f32 %v891_v11, %v868_v8  ;;  %v803_v28 = vmul.f32 1.442695, %v772_v20  ;;  %v2046_v52 = vadd.f32 %v1991_v54, %v463_v14  ;;  %v2058_v48 = vpop.f32.mrb[38].mxu1 }
 0x136   :  { %v1085_v29 = vadd.f32 -1.0, %v1381_v24  ;;  %v467_v30 = vpop.f32.mrb[16].mxu0  ;;  %v1223_v50 = vpop.f32.mrb[39].mxu1 }
 0x137   :  { %1386 = vpow2.f32 %v803_v28  ;;  %v773_v26 = vmin.f32 %v2046_v52, 0.0  ;;  %v468_v0 = vadd.f32 %v467_v30, %v203_v40  ;;  %v469_v32 = vpop.f32.mrb[17].mxu0  ;;  %v223_v11 = vpop.permute.xlu0 %222  ;;  %vm748_vm10 = vcmp.gt.f32.partialorder %v2046_v52, 0.0 }
 0x138   :  { %v869_v25 = vsel %vm744_vm6, %v2016_v34, %v1085_v29 }
 0x139   :  { %v1383_v36 = vpop.eup %1382  ;;  %v893_v37 = vmax.f32 %v892_v27, %v869_v25  ;;  %v805_v38 = vmul.f32 1.442695, %v773_v26  ;;  %v2054_v54 = vadd.f32 %v1993_v57, %v468_v0  ;;  %v2067_v2 = vpop.f32.mrb[40].mxu1 }
 0x13a   :  { %v1086_v42 = vadd.f32 -1.0, %v1383_v36  ;;  %v472_v43 = vpop.f32.mrb[18].mxu0  ;;  %v1226_v7 = vpop.f32.mrb[41].mxu1 }
 0x13b   :  { %1388 = vpow2.f32 %v805_v38  ;;  %v774_v40 = vmin.f32 %v2054_v54, 0.0  ;;  %v473_v47 = vadd.f32 %v472_v43, %v208_v41  ;;  %v474_v44 = vpop.f32.mrb[19].mxu0  ;;  %vm749_vm11 = vcmp.gt.f32.partialorder %v2054_v54, 0.0 }
 0x13c   :  { %v870_v34 = vsel %vm745_vm7, %v2022_v45, %v1086_v42 }
 0x13d   :  { %v1385_v53 = vpop.eup %1384  ;;  %v894_v55 = vmax.f32 %v893_v37, %v870_v34  ;;  %v807_v56 = vmul.f32 1.442695, %v774_v40  ;;  %v2062_v57 = vadd.f32 %v1995_v60, %v473_v47  ;;  %v2076_v14 = vpop.f32.mrb[42].mxu1 }
 0x13e   :  { %v1087_v58 = vadd.f32 -1.0, %v1385_v53  ;;  %v477_v46 = vpop.f32.mrb[20].mxu0  ;;  %v1229_v21 = vpop.f32.mrb[43].mxu1 }
 0x13f   :  { %1390 = vpow2.f32 %v807_v56  ;;  %v775_v62 = vmin.f32 %v2062_v57, 0.0  ;;  %v478_v63 = vadd.f32 %v477_v46, %v2003_v5  ;;  %v479_v1 = vpop.f32.mrb[21].mxu0  ;;  %vm750_vm12 = vcmp.gt.f32.partialorder %v2062_v57, 0.0 }
 0x140   :  { %v871_v45 = vsel %vm746_vm8, %v2028_v59, %v1087_v58 }
 0x141   :  { %v1387_v9 = vpop.eup %1386  ;;  %v895_v10 = vmax.f32 %v894_v55, %v871_v45  ;;  %v809_v49 = vmul.f32 1.442695, %v775_v62  ;;  %v2071_v60 = vadd.f32 %v2001_v4, %v478_v63  ;;  %v2084_v0 = vpop.f32.mrb[44].mxu1 }
 0x142   :  { %v1088_v12 = vadd.f32 -1.0, %v1387_v9  ;;  %v482_v16 = vpop.f32.mrb[22].mxu0  ;;  %v1232_v25 = vpop.f32.mrb[45].mxu1 }
 0x143   :  { %1392 = vpow2.f32 %v809_v49  ;;  %v776_v5 = vmin.f32 %v2071_v60, 0.0  ;;  %v483_v19 = vadd.f32 %v482_v16, %v2030_v61  ;;  %v484_v20 = vpop.f32.mrb[23].mxu0  ;;  %vm751_vm13 = vcmp.gt.f32.partialorder %v2071_v60, 0.0 }
 0x144   :  { %v872_v59 = vsel %vm747_vm9, %v2038_v15, %v1088_v12  ;;  %v228_v15 = vpop.permute.xlu0 %227 }
 0x145   :  { %v1389_v8 = vpop.eup %1388  ;;  %v896_v17 = vmax.f32 %v895_v10, %v872_v59  ;;  %v900_v4 = vmax.f32 %v871_v45, %v872_v59  ;;  %v811_v24 = vmul.f32 1.442695, %v776_v5  ;;  %v2080_v27 = vadd.f32 %v2008_v13, %v483_v19  ;;  %v2092_v44 = vpop.f32.mrb[46].mxu1 }
 0x146   :  { %v1089_v28 = vadd.f32 -1.0, %v1389_v8  ;;  %v487_v29 = vpop.f32.mrb[24].mxu0  ;;  %v1235_v34 = vpop.f32.mrb[47].mxu1 }
 0x147   :  { %1394 = vpow2.f32 %v811_v24  ;;  %v777_v61 = vmin.f32 %v2080_v27, 0.0  ;;  %v488_v30 = vadd.f32 %v487_v29, %v223_v11  ;;  %v489_v26 = vpop.f32.mrb[25].mxu0  ;;  %vm752_vm14 = vcmp.gt.f32.partialorder %v2080_v27, 0.0 }
 0x148   :  { %v873_v32 = vsel %vm748_vm10, %v2046_v52, %v1089_v28  ;;  %v233_v58 = vpop.permute.xlu0 %232 }
 0x149   :  { %v1391_v35 = vpop.eup %1390  ;;  %v897_v36 = vmax.f32 %v896_v17, %v873_v32  ;;  %v901_v37 = vmax.f32 %v900_v4, %v873_v32  ;;  %v813_v13 = vmul.f32 1.442695, %v777_v61  ;;  %v2088_v38 = vadd.f32 %v2012_v6, %v488_v30  ;;  %v248_v4 = vpop.permute.xlu1 %247 }
 0x14a   :  { %v1090_v41 = vadd.f32 -1.0, %v1391_v35  ;;  %v492_v42 = vpop.f32.mrb[26].mxu0 }
 0x14b   :  { %1396 = vpow2.f32 %v813_v13  ;;  %v778_v43 = vmin.f32 %v2088_v38, 0.0  ;;  %v493_v40 = vadd.f32 %v492_v42, %v228_v15  ;;  %v494_v47 = vpop.f32.mrb[27].mxu0  ;;  %vm753_vm15 = vcmp.gt.f32.partialorder %v2088_v38, 0.0 }
 0x14c   :  { %v874_v52 = vsel %vm749_vm11, %v2054_v54, %v1090_v41  ;;  %v2102_v54 = vpop.f32.mrb[48].mxu1 }
 0x14d   :  { %v1393_v50 = vpop.eup %1392  ;;  %v2095_v53 = vmax.f32 %v897_v36, %v874_v52  ;;  %v902_v55 = vmax.f32 %v901_v37, %v874_v52  ;;  %v815_v6 = vmul.f32 1.442695, %v778_v43  ;;  %v2098_v56 = vadd.f32 %v2014_v31, %v493_v40  ;;  %v1238_v9 = vpop.f32.mrb[49].mxu1 }
 0x14e   :  { %v1091_v46 = vadd.f32 -1.0, %v1393_v50  ;;  %v497_v62 = vpop.f32.mrb[28].mxu0 }
 0x14f   :  { %1398 = vpow2.f32 %v815_v6  ;;  %v779_v63 = vmin.f32 %v2098_v56, 0.0  ;;  %v498_v1 = vadd.f32 %v497_v62, %v233_v58  ;;  %v499_v45 = vpop.f32.mrb[29].mxu0  ;;  %vm754_vm0 = vcmp.gt.f32.partialorder %v2098_v56, 0.0 }
 0x150   :  { %v2105_v7 = vsel %vm750_vm12, %v2062_v57, %v1091_v46 }
 0x151   :  { %v1395_v10 = vpop.eup %1394  ;;  %v903_v31 = vmax.f32 %v902_v55, %v2105_v7  ;;  %v817_v49 = vmul.f32 1.442695, %v779_v63  ;;  %v2109_v11 = vadd.f32 %v2019_v39, %v498_v1  ;;  %v899_v12 = vmax.f32 %v2095_v53, %v2105_v7 }
 0x152   :  { %v1092_v16 = vadd.f32 -1.0, %v1395_v10  ;;  %v502_v5 = vpop.f32.mrb[30].mxu0 }
 0x153   :  { %1400 = vpow2.f32 %v817_v49  ;;  %v780_v19 = vmin.f32 %v2109_v11, 0.0  ;;  %v503_v57 = vadd.f32 %v502_v5, %v2010_v18  ;;  %v504_v20 = vpop.f32.mrb[31].mxu0  ;;  %vm755_vm1 = vcmp.gt.f32.partialorder %v2109_v11, 0.0 }
 0x154   :  { %v876_v59 = vsel %vm751_vm13, %v2071_v60, %v1092_v16  ;;  %vm1023_vm13 = vcmask 1040384  }
 0x155   :  { %v1397_v21 = vpop.eup %1396  ;;  %v904_v8 = vmax.f32 %v903_v31, %v876_v59  ;;  %v819_v17 = vmul.f32 1.442695, %v780_v19  ;;  %v2118_v39 = vadd.f32 %v2025_v51, %v503_v57  ;;  %v263_v57 = vpop.permute.xlu0 %262 }
 0x156   :  { %v1093_v24 = vadd.f32 -1.0, %v1397_v21  ;;  %v507_v28 = vpop.f32.mrb[32].mxu0 }
 0x157   :  { %1402 = vpow2.f32 %v819_v17  ;;  %v781_v29 = vmin.f32 %v2118_v39, 0.0  ;;  %v508_v61 = vadd.f32 %v507_v28, %v2043_v23  ;;  %v509_v18 = vpop.f32.mrb[33].mxu0  ;;  %v253_v23 = vpop.permute.xlu1 %252  ;;  %vm756_vm3 = vcmp.gt.f32.partialorder %v2118_v39, 0.0 }
 0x158   :  { %v877_v30 = vsel %vm752_vm14, %v2080_v27, %v1093_v24 }
 0x159   :  { %v1399_v60 = vpop.eup %1398  ;;  %v905_v26 = vmax.f32 %v904_v8, %v877_v30  ;;  %v909_v15 = vmax.f32 %v876_v59, %v877_v30  ;;  %v821_v32 = vmul.f32 1.442695, %v781_v29  ;;  %v2125_v51 = vadd.f32 %v2034_v3, %v508_v61 }
 0x15a   :  { %v1094_v25 = vadd.f32 -1.0, %v1399_v60  ;;  %v512_v35 = vpop.f32.mrb[34].mxu0 }
 0x15b   :  { %1404 = vpow2.f32 %v821_v32  ;;  %v782_v36 = vmin.f32 %v2125_v51, 0.0  ;;  %v513_v37 = vadd.f32 %v512_v35, %v248_v4  ;;  %v514_v13 = vpop.f32.mrb[35].mxu0  ;;  %vm757_vm4 = vcmp.gt.f32.partialorder %v2125_v51, 0.0 }
 0x15c   :  { %v878_v41 = vsel %vm753_vm15, %v2088_v38, %v1094_v25  ;;  %v273_v25 = vpop.permute.xlu0 %272 }
 0x15d   :  { %v1401_v27 = vpop.eup %1400  ;;  %v906_v42 = vmax.f32 %v905_v26, %v878_v41  ;;  %v910_v43 = vmax.f32 %v909_v15, %v878_v41  ;;  %v823_v40 = vmul.f32 1.442695, %v782_v36  ;;  %v2131_v47 = vadd.f32 %v2041_v22, %v513_v37  ;;  %v258_v22 = vpop.permute.xlu1 %257 }
 0x15e   :  { %v1095_v3 = vadd.f32 -1.0, %v1401_v27  ;;  %v517_v52 = vpop.f32.mrb[36].mxu0 }
 0x15f   :  { %1406 = vpow2.f32 %v823_v40  ;;  %v783_v34 = vmin.f32 %v2131_v47, 0.0  ;;  %v518_v50 = vadd.f32 %v517_v52, %v253_v23  ;;  %v519_v55 = vpop.f32.mrb[37].mxu0  ;;  %vm758_vm5 = vcmp.gt.f32.partialorder %v2131_v47, 0.0 }
 0x160   :  { %v879_v6 = vsel %vm754_vm0, %v2098_v56, %v1095_v3 }
 0x161   :  { %v1403_v58 = vpop.eup %1402  ;;  %v907_v38 = vmax.f32 %v906_v42, %v879_v6  ;;  %v911_v46 = vmax.f32 %v910_v43, %v879_v6  ;;  %v825_v62 = vmul.f32 1.442695, %v783_v34  ;;  %v2137_v63 = vadd.f32 %v2050_v33, %v518_v50  ;;  %v268_v61 = vpop.permute.xlu1 %267 }
 0x162   :  { %v1096_v1 = vadd.f32 -1.0, %v1403_v58  ;;  %v522_v45 = vpop.f32.mrb[38].mxu0 }
 0x163   :  { %1408 = vpow2.f32 %v825_v62  ;;  %v784_v9 = vmin.f32 %v2137_v63, 0.0  ;;  %v523_v10 = vadd.f32 %v522_v45, %v258_v22  ;;  %v524_v31 = vpop.f32.mrb[39].mxu0  ;;  %vm759_vm6 = vcmp.gt.f32.partialorder %v2137_v63, 0.0  ;;  %v283_v22 = vpop.permute.xlu0 %282 }
 0x164   :  { %v880_v49 = vsel %vm755_vm1, %v2109_v11, %v1096_v1 }
 0x165   :  { %v1405_v56 = vpop.eup %1404  ;;  %v912_v16 = vmax.f32 %v911_v46, %v880_v49  ;;  %v827_v5 = vmul.f32 1.442695, %v784_v9  ;;  %v2143_v19 = vadd.f32 %v2058_v48, %v523_v10  ;;  %v908_v33 = vmax.f32 %v907_v38, %v880_v49  ;;  %v278_v3 = vpop.permute.xlu1 %277 }
 0x166   :  { %v1097_v20 = vadd.f32 -1.0, %v1405_v56  ;;  %v527_v59 = vpop.f32.mrb[40].mxu0 }
 0x167   :  { %1410 = vpow2.f32 %v827_v5  ;;  %v785_v21 = vmin.f32 %v2143_v19, 0.0  ;;  %v528_v8 = vadd.f32 %v527_v59, %v263_v57  ;;  %v529_v17 = vpop.f32.mrb[41].mxu0  ;;  %v1310_v11 = vpack.c.bf16 %v908_v33, %v899_v12 }
 0x168   :  { %v881_v4 = vsel %vm756_vm3, %v2118_v39, %v1097_v20  ;;  %vm760_vm7 = vcmp.gt.f32.partialorder %v2143_v19, 0.0 }
 0x169   :  { %v1407_v24 = vpop.eup %1406  ;;  %v913_v48 = vmax.f32 %v912_v16, %v881_v4  ;;  %v829_v28 = vmul.f32 1.442695, %v785_v21  ;;  %v2152_v29 = vadd.f32 %v2067_v2, %v528_v8  ;;  %1311 = vmatprep.subr.bf16.mxu1 %v1310_v11 }
 0x16a   :  { %v1098_v18 = vadd.f32 -1.0, %v1407_v24  ;;  %v532_v30 = vpop.f32.mrb[42].mxu0  ;;  %1313 = vmatpush3.bf16.msra.mxu1 %v1310_v11 }
 0x16b   :  { %1412 = vpow2.f32 %v829_v28  ;;  %v786_v60 = vmin.f32 %v2152_v29, 0.0  ;;  %v533_v39 = vadd.f32 %v532_v30, %v268_v61  ;;  %v534_v26 = vpop.f32.mrb[43].mxu0  ;;  %vm761_vm8 = vcmp.gt.f32.partialorder %v2152_v29, 0.0 }
 0x16c   :  { %v882_v53 = vsel %vm757_vm4, %v2125_v51, %v1098_v18 }
 0x16d   :  { %v1409_v7 = vpop.eup %1408  ;;  %v914_v12 = vmax.f32 %v913_v48, %v882_v53  ;;  %v918_v15 = vmax.f32 %v881_v4, %v882_v53  ;;  %v831_v32 = vmul.f32 1.442695, %v786_v60  ;;  %v723_v2 = vadd.f32 %v2076_v14, %v533_v39  ;;  %v928_v53 = vld [vmem:[%s2185_s3 + $0x8] sm:$0x1] }
 0x16e   :  { %v1099_v35 = vadd.f32 -1.0, %v1409_v7  ;;  %v537_v36 = vpop.f32.mrb[44].mxu0  ;;  %v939_v7 = vpop.permute.xlu1 %938 }
 0x16f   :  { %1414 = vpow2.f32 %v831_v32  ;;  %v787_v37 = vmin.f32 %v723_v2, 0.0  ;;  %v538_v13 = vadd.f32 %v537_v36, %v273_v25  ;;  %v539_v23 = vpop.f32.mrb[45].mxu0  ;;  %vm762_vm9 = vcmp.gt.f32.partialorder %v723_v2, 0.0 }
 0x170   :  { %v883_v41 = vsel %vm758_vm5, %v2131_v47, %v1099_v35 }
 0x171   :  { %v1411_v27 = vpop.eup %1410  ;;  %v915_v42 = vmax.f32 %v914_v12, %v883_v41  ;;  %v919_v51 = vmax.f32 %v918_v15, %v883_v41  ;;  %v833_v43 = vmul.f32 1.442695, %v787_v37  ;;  %v728_v40 = vadd.f32 %v2084_v0, %v538_v13  ;;  %v934_v15 = vpop.permute.xlu0 %933 }
 0x172   :  { %v1100_v52 = vadd.f32 -1.0, %v1411_v27  ;;  %v542_v14 = vpop.f32.mrb[46].mxu0 }
 0x173   :  { %1416 = vpow2.f32 %v833_v43  ;;  %v788_v34 = vmin.f32 %v728_v40, 0.0  ;;  %v543_v50 = vadd.f32 %v542_v14, %v278_v3  ;;  %v544_v55 = vpop.f32.mrb[47].mxu0  ;;  %vm763_vm10 = vcmp.gt.f32.partialorder %v728_v40, 0.0 }
 0x174   :  { %v884_v6 = vsel %vm759_vm6, %v2137_v63, %v1100_v52 }
 0x175   :  { %v1413_v58 = vpop.eup %1412  ;;  %v916_v38 = vmax.f32 %v915_v42, %v884_v6  ;;  %v920_v47 = vmax.f32 %v919_v51, %v884_v6  ;;  %v835_v46 = vmul.f32 1.442695, %v788_v34  ;;  %v733_v62 = vadd.f32 %v2092_v44, %v543_v50 }
 0x176   :  { %v1101_v1 = vadd.f32 -1.0, %v1413_v58  ;;  %v547_v0 = vpop.f32.mrb[48].mxu0 }
 0x177   :  { %1418 = vpow2.f32 %v835_v46  ;;  %v789_v45 = vmin.f32 %v733_v62, 0.0  ;;  %v548_v9 = vadd.f32 %v547_v0, %v283_v22  ;;  %v549_v10 = vpop.f32.mrb[49].mxu0  ;;  %vm764_vm11 = vcmp.gt.f32.partialorder %v733_v62, 0.0 }
 0x178   :  { %v885_v31 = vsel %vm760_vm7, %v2143_v19, %v1101_v1 }
 0x179   :  { %v1415_v49 = vpop.eup %1414  ;;  %v921_v56 = vmax.f32 %v920_v47, %v885_v31  ;;  %v837_v63 = vmul.f32 1.442695, %v789_v45  ;;  %v738_v16 = vadd.f32 %v2102_v54, %v548_v9  ;;  %v917_v5 = vmax.f32 %v916_v38, %v885_v31 }
 0x17a   :  { %v1102_v33 = vadd.f32 -1.0, %v1415_v49 }
 0x17b   :  { %1420 = vpow2.f32 %v837_v63  ;;  %v790_v44 = vmin.f32 %v738_v16, 0.0  ;;  %vm765_vm12 = vcmp.gt.f32.partialorder %v738_v16, 0.0 }
 0x17c   :  { %v886_v57 = vsel %vm761_vm8, %v2152_v29, %v1102_v33 }
 0x17d   :  { %v1417_v20 = vpop.eup %1416  ;;  %v922_v59 = vmax.f32 %v921_v56, %v886_v57  ;;  %v839_v21 = vmul.f32 1.442695, %v790_v44 }
 0x17e   :  { %v1103_v8 = vadd.f32 -1.0, %v1417_v20 }
 0x17f   :  { %1422 = vpow2.f32 %v839_v21 }
 0x180   :  { %v887_v19 = vsel %vm762_vm9, %v723_v2, %v1103_v8 }
 0x181   :  { %v1419_v17 = vpop.eup %1418  ;;  %v923_v4 = vmax.f32 %v922_v59, %v887_v19 }
 0x182   :  { %v1104_v11 = vadd.f32 -1.0, %v1419_v17 }
 0x184   :  { %v888_v54 = vsel %vm763_vm10, %v728_v40, %v1104_v11 }
 0x185   :  { %v1421_v24 = vpop.eup %1420  ;;  %v924_v48 = vmax.f32 %v923_v4, %v888_v54 }
 0x186   :  { %v1105_v28 = vadd.f32 -1.0, %v1421_v24 }
 0x188   :  { %v889_v61 = vsel %vm764_vm11, %v733_v62, %v1105_v28 }
 0x189   :  { %v1423_v18 = vpop.eup %1422  ;;  %v925_v30 = vmax.f32 %v924_v48, %v889_v61 }
 0x18a   :  { %v1106_v29 = vadd.f32 -1.0, %v1423_v18 }
 0x18c   :  { %v890_v60 = vsel %vm765_vm12, %v738_v16, %v1106_v29 }
 0x18d   :  { %v926_v39 = vmax.f32 %v925_v30, %v890_v60 }
 0x18f   :  { %v1314_v26 = vpack.c.bf16 %v926_v39, %v917_v5 }
 0x191   :  { %1315 = vmatprep.subr.bf16.mxu1 %v1314_v26 }
 0x192   :  { %1317 = vmatpush3.bf16.msra.mxu1 %v1314_v26 }
 0x195   :  { %1248 = vmatmul.mubr.msk.f32.vlgmr.msra.gmra.mrb[50].mxu1 %vm941_vm2, %v928_v53 }
 0x268   :  { %v1249_v12 = vpop.f32.mrb[50].mxu1 }
 0x269   :  { %v1020_v32 = vadd.f32 %v1249_v12, %v939_v7  ;;  %v1014_v2 = vpop.f32.mrb[51].mxu1 }
 0x26a   :  { %v1015_v25 = vadd.f32 %v1014_v2, %v934_v15 }
 0x26b   :  { %v1024_v35 = vsel %vm1023_vm13, %v1020_v32, -inf }
 0x26c   :  { %v1025_v36 = vmax.f32 %v1015_v25, %v1024_v35 }
 0x26e   :  { %v1026_v37 = vrot.slane %v1025_v36, 4 }
 0x270   :  { %v1027_v13 = vmax.f32 %v1025_v36, %v1026_v37 }
 0x272   :  { %v1028_v23 = vrot.slane %v1027_v13, 2 }
 0x274   :  { %v1029_v41 = vmax.f32 %v1027_v13, %v1028_v23 }
 0x276   :  { %v1030_v27 = vrot.slane %v1029_v41, 1 }
 0x278   :  { %v1031_v42 = vmax.f32 %v1029_v41, %v1030_v27 }
 0x27a   :  { %v1032_v51 = vsub.f32 %v1015_v25, %v1031_v42  ;;  %v1033_v43 = vsub.f32 %v1020_v32, %v1031_v42 }
 0x27c   :  { %v1034_v40 = vmul.f32 1.442695, %v1032_v51  ;;  %v1036_v3 = vmul.f32 1.442695, %v1033_v43 }
 0x27e   :  { %1424 = vpow2.f32 %v1034_v40 }
 0x27f   :  { %1426 = vpow2.f32 %v1036_v3 }
 0x288   :  { %v1425_v52 = vpop.eup %1424 }
 0x289   :  { %v1427_v14 = vpop.eup %1426 }
 0x28a   :  { %v1038_v34 = vsel %vm1023_vm13, %v1427_v14, 0.0 }
 0x28b   :  { %v1039_v50 = vadd.f32 %v1425_v52, %v1038_v34 }
 0x28d   :  { %v1040_v55 = vrot.slane %v1039_v50, 4 }
 0x28f   :  { %v1041_v6 = vadd.f32 %v1040_v55, %v1039_v50 }
 0x291   :  { %v1042_v58 = vrot.slane %v1041_v6, 2 }
 0x293   :  { %v1043_v38 = vadd.f32 %v1042_v58, %v1041_v6 }
 0x295   :  { %v1044_v47 = vrot.slane %v1043_v38, 1 }
 0x297   :  { %v1045_v46 = vadd.f32 %v1044_v47, %v1043_v38 }
 0x299   :  { %1428 = vlog2.f32 %v1045_v46 }
 0x2a3   :  { %v1429_v62 = vpop.eup %1428 }
 0x2a4   :  { %v1047_v22 = vmul.f32 0.6931472, %v1429_v62 }
 0x2a6   :  { %v1048_v1 = vadd.f32 %v1047_v22, %v1031_v42 }
 0x2a8   :  { %v1049_v0 = vsub.f32 %v1015_v25, %v1048_v1  ;;  %v1050_v45 = vsub.f32 %v1020_v32, %v1048_v1 }
 0x2aa   :  { %1051 = vst [vmem:[%s2186_s5] sm:$0xff] %v1049_v0  ;;  %1052 = vst [vmem:[%s2186_s5 + $0x8] sm:$0x1] %v1050_v45 }

</bundles_post_ra>
